<compile_context>
chip_gen: v6e
topology: v6e:2x2x1
jax: 0.10.0
libtpu: 0.0.40
codegen_flags: <defaults>
</compile_context>

<pallas_src>
import functools

import jax
import jax.numpy as jnp
from jax.experimental import pallas as pl
from jax.experimental.pallas import tpu as pltpu

EPS = 1e-12

_TARGET_BLOCK_BYTES = 2 << 20     # ~2 MiB per input block (double-buffered by pipeline)
_MAX_LANES = 2048                 # lane tile upper bound (multiple of 128)


def _prefetch_basic_kernel(x_ref, norm_ref, attn_ref, sum_ref, *, inv_hw, inv_c):
    """One grid step processes a (TB, C, THW) slab of TB images.

    grid = (B // TB, HW_pad // THW); axis 0 "parallel" (batch groups),
    axis 1 "arbitrary" (spatial tiles; scratch + norm output resident across it).
    """
    t = pl.program_id(1)

    x = x_ref[...].astype(jnp.float32)                        # (TB, C, THW)

    @pl.when(t == 0)
    def _init():
        sum_ref[...] = jnp.zeros_like(sum_ref)

    # Accumulate the per-channel spatial sum across HW tiles (f32 accumulator, XLU).
    sum_ref[...] += jnp.sum(x, axis=2, keepdims=True)         # (TB, C, 1)

    # Attention map tile: mean over channels, lane-dense write (THW multiple of 128).
    attn_ref[...] = (jnp.sum(x, axis=1, keepdims=True) * inv_c).astype(attn_ref.dtype)

    @pl.when(t == pl.num_programs(1) - 1)
    def _finalize():
        pooled = sum_ref[...] * inv_hw                                        # (TB, C, 1)
        l2 = jnp.sqrt(jnp.sum(pooled * pooled, axis=1, keepdims=True))        # (TB, 1, 1)
        # approx=False: eps = 1e-12 demands full-precision reciprocal to match
        # the torch reference at 1e-5 tolerance.
        normed = pooled * pl.reciprocal(l2 + EPS, approx=False)
        norm_ref[...] = normed.astype(norm_ref.dtype)


def _choose_tiles(B, C, HW, itemsize):
    """Pick (TB, THW, HW_pad): lane-dense spatial tile and images per step."""
    # Lane tile: as big as possible (multiple of 128) while one block stays under target.
    cap = min(_MAX_LANES, max(128, (_TARGET_BLOCK_BYTES // (C * itemsize)) // 128 * 128))
    if HW <= cap:
        thw, hw_pad = HW, HW                     # full extent: always a legal block dim
    else:
        thw = 0
        t = cap
        while t >= 128:                          # prefer a 128-multiple divisor of HW
            if HW % t == 0:
                thw = t
                break
            t -= 128
        if thw == 0:                             # no clean divisor: zero-pad the tail
            thw = cap
        hw_pad = -(-HW // thw) * thw

    # Batch several images per step while the input block stays under target.
    per_img = C * thw * itemsize
    tb = 1
    for cand in range(B, 0, -1):
        if B % cand == 0 and cand * per_img <= _TARGET_BLOCK_BYTES:
            tb = cand
            break
    return tb, thw, hw_pad


def prefetch_basic(x):
    """x: (B, C, H, W). Returns (norm_out (B,C,1,1), attention_map (B,1,H,W))."""
    B, C, H, W = x.shape
    HW = H * W
    dtype = x.dtype
    x3 = x.reshape(B, C, HW)

    tb, thw, hw_pad = _choose_tiles(B, C, HW, jnp.dtype(dtype).itemsize)
    if hw_pad != HW:
        # Zero padding does not perturb the channel sums (we divide by the true HW);
        # padded attention columns are sliced off below.
        x3 = jnp.pad(x3, ((0, 0), (0, 0), (0, hw_pad - HW)))

    grid = (B // tb, hw_pad // thw)
    kernel = functools.partial(_prefetch_basic_kernel, inv_hw=1.0 / HW, inv_c=1.0 / C)

    norm_flat, attn_flat = pl.pallas_call(
        kernel,
        out_shape=(
            jax.ShapeDtypeStruct((B, C, 1), dtype),
            jax.ShapeDtypeStruct((B, 1, hw_pad), dtype),
        ),
        grid_spec=pltpu.PrefetchScalarGridSpec(
            num_scalar_prefetch=0,
            grid=grid,
            in_specs=[
                pl.BlockSpec((tb, C, thw), lambda b, t: (b, 0, t)),
            ],
            out_specs=[
                pl.BlockSpec((tb, C, 1), lambda b, t: (b, 0, 0)),     # resident across t
                pl.BlockSpec((tb, 1, thw), lambda b, t: (b, 0, t)),   # lane-dense per tile
            ],
            scratch_shapes=[pltpu.VMEM((tb, C, 1), jnp.float32)],
        ),
        compiler_params=pltpu.CompilerParams(
            dimension_semantics=("parallel", "arbitrary"),
        ),
    )(x3)

    norm_out = norm_flat.reshape(B, C, 1, 1)
    attention_map = attn_flat[:, :, :HW].reshape(B, 1, H, W)
    return norm_out, attention_map


def _reference(x):
    # Pure-JAX reference of the PyTorch forward (pool = global avg pool).
    xf = x.astype(jnp.float32)
    pooled = jnp.mean(xf, axis=(2, 3), keepdims=True)                    # (B, C, 1, 1)
    l2 = jnp.sqrt(jnp.sum(pooled * pooled, axis=1, keepdims=True))       # (B, 1, 1, 1)
    norm_out = pooled / (l2 + EPS)
    attention_map = jnp.mean(xf, axis=1, keepdims=True)                  # (B, 1, H, W)
    return norm_out.astype(x.dtype), attention_map.astype(x.dtype)


def _check(x):
    norm_out, attention_map = prefetch_basic(x)
    jax.block_until_ready((norm_out, attention_map))
    ref_norm, ref_attn = _reference(x)
    B, C, H, W = x.shape
    assert norm_out.shape == (B, C, 1, 1)
    assert attention_map.shape == (B, 1, H, W)
    assert jnp.allclose(norm_out, ref_norm, atol=1e-5, rtol=1e-5)
    assert jnp.allclose(attention_map, ref_attn, atol=1e-5, rtol=1e-5)


if __name__ == "__main__":
    key = jax.random.PRNGKey(0)
    k0, k1, k2 = jax.random.split(key, 3)

    # Primary small case (matches the module's expected usage scale for tests).
    _check(jax.random.normal(k0, (2, 4, 16, 16), dtype=jnp.float32))

    # Exercises HW tiling with a clean 128-multiple divisor (HW=2304 -> 2 spatial tiles).
    _check(jax.random.normal(k1, (2, 8, 48, 48), dtype=jnp.float32))

    # Exercises the zero-padding fallback (HW=2500 has no 128-multiple divisor <= cap).
    _check(jax.random.normal(k2, (2, 4, 50, 50), dtype=jnp.float32))

    print("KERNEL_OK")
</pallas_src>

<mosaic_0001>
module attributes {stable_mosaic.version = 11 : i64} {
  func.func @_prefetch_basic_kernel(%arg0: i32, %arg1: i32, %arg2: memref<2x4x256xf32, #tpu.memory_space<vmem>>, %arg3: memref<2x4x1xf32, #tpu.memory_space<vmem>>, %arg4: memref<2x1x256xf32, #tpu.memory_space<vmem>>, %arg5: memref<2x4x1xf32, #tpu.memory_space<vmem>>) attributes {dimension_semantics = [#tpu.dimension_semantics<parallel>, #tpu.dimension_semantics<arbitrary>], iteration_bounds = array<i64: 1, 1>, scalar_prefetch = 0 : i64, scratch_operands = 1 : i64, tpu.core_type = #tpu.core_type<tc>, window_params = [{transform_indices = @transform_0, window_bounds = array<i64: 2, 4, 256>}, {transform_indices = @transform_1, window_bounds = array<i64: 2, 4, 1>}, {transform_indices = @transform_2, window_bounds = array<i64: 2, 1, 256>}]} {
    %c0 = arith.constant 0 : index
    %c0_0 = arith.constant 0 : index
    %c0_1 = arith.constant 0 : index
    %0 = vector.load %arg2[%c0, %c0_0, %c0_1] : memref<2x4x256xf32, #tpu.memory_space<vmem>>, vector<2x4x256xf32>
    %c0_i32 = arith.constant 0 : i32
    %1 = arith.cmpi eq, %arg1, %c0_i32 : i32
    %2 = arith.extui %1 : i1 to i32
    %c0_i32_2 = arith.constant 0 : i32
    %3 = arith.cmpi ne, %2, %c0_i32_2 : i32
    scf.if %3 {
      %cst_16 = arith.constant 0.000000e+00 : f32
      %17 = vector.broadcast %cst_16 : f32 to vector<2x4x1xf32>
      %c0_17 = arith.constant 0 : index
      %c0_18 = arith.constant 0 : index
      %c0_19 = arith.constant 0 : index
      %18 = vector.load %arg5[%c0_17, %c0_18, %c0_19] : memref<2x4x1xf32, #tpu.memory_space<vmem>>, vector<2x4x1xf32>
      tpu.vector_store %arg5[%c0_17, %c0_18, %c0_19], %17 {strides = array<i32>} : memref<2x4x1xf32, #tpu.memory_space<vmem>>, vector<2x4x1xf32>,
    } else {
    }
    %c0_3 = arith.constant 0 : index
    %c0_4 = arith.constant 0 : index
    %c0_5 = arith.constant 0 : index
    %4 = vector.load %arg5[%c0_3, %c0_4, %c0_5] : memref<2x4x1xf32, #tpu.memory_space<vmem>>, vector<2x4x1xf32>
    %cst = arith.constant dense<0.000000e+00> : vector<2x4xf32>
    %5 = vector.multi_reduction <add>, %0, %cst [2] : vector<2x4x256xf32> to vector<2x4xf32>
    %6 = vector.shape_cast %5 : vector<2x4xf32> to vector<2x4x1xf32>
    %7 = arith.addf %4, %6 : vector<2x4x1xf32>
    %c0_6 = arith.constant 0 : index
    %c0_7 = arith.constant 0 : index
    %c0_8 = arith.constant 0 : index
    %8 = vector.load %arg5[%c0_6, %c0_7, %c0_8] : memref<2x4x1xf32, #tpu.memory_space<vmem>>, vector<2x4x1xf32>
    tpu.vector_store %arg5[%c0_6, %c0_7, %c0_8], %7 {strides = array<i32>} : memref<2x4x1xf32, #tpu.memory_space<vmem>>, vector<2x4x1xf32>,
    %cst_9 = arith.constant dense<0.000000e+00> : vector<2x256xf32>
    %9 = vector.multi_reduction <add>, %0, %cst_9 [1] : vector<2x4x256xf32> to vector<2x256xf32>
    %10 = vector.shape_cast %9 : vector<2x256xf32> to vector<2x1x256xf32>
    %cst_10 = arith.constant 2.500000e-01 : f32
    %11 = vector.broadcast %cst_10 : f32 to vector<2x1x256xf32>
    %12 = arith.mulf %10, %11 : vector<2x1x256xf32>
    %c0_11 = arith.constant 0 : index
    %c0_12 = arith.constant 0 : index
    %c0_13 = arith.constant 0 : index
    %13 = vector.load %arg4[%c0_11, %c0_12, %c0_13] : memref<2x1x256xf32, #tpu.memory_space<vmem>>, vector<2x1x256xf32>
    tpu.vector_store %arg4[%c0_11, %c0_12, %c0_13], %12 {strides = array<i32>} : memref<2x1x256xf32, #tpu.memory_space<vmem>>, vector<2x1x256xf32>,
    %c0_i32_14 = arith.constant 0 : i32
    %14 = arith.cmpi eq, %arg1, %c0_i32_14 : i32
    %15 = arith.extui %14 : i1 to i32
    %c0_i32_15 = arith.constant 0 : i32
    %16 = arith.cmpi ne, %15, %c0_i32_15 : i32
    scf.if %16 {
      %c0_16 = arith.constant 0 : index
      %c0_17 = arith.constant 0 : index
      %c0_18 = arith.constant 0 : index
      %17 = vector.load %arg5[%c0_16, %c0_17, %c0_18] : memref<2x4x1xf32, #tpu.memory_space<vmem>>, vector<2x4x1xf32>
      %cst_19 = arith.constant 3.906250e-03 : f32
      %18 = vector.broadcast %cst_19 : f32 to vector<2x4x1xf32>
      %19 = arith.mulf %17, %18 : vector<2x4x1xf32>
      %20 = arith.mulf %19, %19 : vector<2x4x1xf32>
      %cst_20 = arith.constant dense<0.000000e+00> : vector<2x1xf32>
      %21 = vector.multi_reduction <add>, %20, %cst_20 [1] : vector<2x4x1xf32> to vector<2x1xf32>
      %22 = vector.shape_cast %21 : vector<2x1xf32> to vector<2x1x1xf32>
      %23 = math.sqrt %22 : vector<2x1x1xf32>
      %cst_21 = arith.constant 9.99999996E-13 : f32
      %24 = vector.broadcast %cst_21 : f32 to vector<2x1x1xf32>
      %25 = arith.addf %23, %24 : vector<2x1x1xf32>
      %26 = tpu.reciprocal %25 : vector<2x1x1xf32> -> vector<2x1x1xf32>
      %27 = vector.broadcast %26 : vector<2x1x1xf32> to vector<2x4x1xf32>
      %28 = arith.mulf %19, %27 : vector<2x4x1xf32>
      %c0_22 = arith.constant 0 : index
      %c0_23 = arith.constant 0 : index
      %c0_24 = arith.constant 0 : index
      %29 = vector.load %arg3[%c0_22, %c0_23, %c0_24] : memref<2x4x1xf32, #tpu.memory_space<vmem>>, vector<2x4x1xf32>
      tpu.vector_store %arg3[%c0_22, %c0_23, %c0_24], %28 {strides = array<i32>} : memref<2x4x1xf32, #tpu.memory_space<vmem>>, vector<2x4x1xf32>,
    } else {
    }
    return
  }
  func.func @transform_0(%arg0: i32, %arg1: i32) -> (i32, i32, i32) {
    %c0_i32 = arith.constant 0 : i32
    %c0_i32_0 = arith.constant 0 : i32
    return %arg0, %c0_i32, %arg1 : i32, i32, i32
  }
  func.func @transform_1(%arg0: i32, %arg1: i32) -> (i32, i32, i32) {
    %c0_i32 = arith.constant 0 : i32
    %c0_i32_0 = arith.constant 0 : i32
    %c0_i32_1 = arith.constant 0 : i32
    return %arg0, %c0_i32, %c0_i32_0 : i32, i32, i32
  }
  func.func @transform_2(%arg0: i32, %arg1: i32) -> (i32, i32, i32) {
    %c0_i32 = arith.constant 0 : i32
    %c0_i32_0 = arith.constant 0 : i32
    return %arg0, %c0_i32, %arg1 : i32, i32, i32
  }
}

</mosaic_0001>

<bundles_post_ra>
// kernel: tpu_custom_call.1
= control target key start
LH: loop header
LB: loop body
LE: loop exit
PB: predicated region body
PF: predicated region fallthrough
CT: control target
= control target key end

     0   :  { %8 = vsyncpa [#allocation4], 0  ;;  %s299_s0 = inlined_call_operand.hbm [shape: f32[2,4,256], index: 0, kind: input, shape index: {}]   ;;  %s300_s1 = inlined_call_operand.vmem [shape: f32[2,4,1], index: 1, kind: output, shape index: {0}]   ;;  %s301_s2 = inlined_call_operand.hbm [shape: f32[2,1,256], index: 2, kind: output, shape index: {1}]  }
   0x1   :  { %9 = vsyncpa [#allocation5], 0  ;;  %s256_s9 = smov [#allocation3]  }
   0x2   :  { %s15_s10 = sshll.u32 %s256_s9, 4  ;;  %s16_s10 = int_to_ptr.vmem [resolvable:$true] %s15_s10 }
   0x3   :  { %s220_s11 = scalar_lea.vmem %s16_s10, 256  ;;  %p225_p1 = scmp.lt.s32.totalorder %s16_s10, %s16_s10 }
   0x4   :  { %p221_p0 = scmp.ne.s32.totalorder %s16_s10, %s220_s11  ;;  %p226_p2 = scmp.lt.s32.totalorder %s220_s11, %s220_s11 }
   0x6   :  { %p227_p3 = por %p226_p2, %p225_p1 }
   0x8   :  { %p228_p4 = pnand %p227_p3, %p221_p0 }
   0xa   :  { %231 = shalt.err (!%p228_p4)
}
   0xb   :  { %s257_s12 = smov 128   ;;  %s258_s13 = smov 8  }
   0xc   :  { %21 = dma.hbm_to_vmem [thread:$0]  %s299_s0, 256, %s16_s10, [#allocation4], %s257_s12, %s257_s12, %s258_s13  }
   0xd   :  { %252 = dma.done.wait [#allocation4], 256  }
   0xe   :  { %253 = vsyncadd [#allocation4], 4294967040  ;;  %vm31_vm0 = vcmask 3072   ;;  %v259_v0 = vmov 0.0   ;;  %vm42_vm1 = vcmask 1043456   ;;  %v25_v1 = vld [vmem:[#allocation3] sm:$0xff]  ;;  %v94_v41 = vlaneseq }
   0xf   :  { %32 = vst.msk [vmem:[#allocation2] sm:$0xf] %vm31_vm0, %v259_v0  ;;  %33 = vst.msk [vmem:[#allocation2 + $0x4] sm:$0xf] %vm31_vm0, %v259_v0  ;;  %v26_v2 = vld [vmem:[#allocation3 + $0x8] sm:$0xff]  ;;  %v38_v3 = vcombine.high %v25_v1, %v25_v1  ;;  %v43_v4 = vsel %vm42_vm1, %v25_v1, 0.0 }
  0x10   :  { %v39_v5 = vcombine.high %v26_v2, %v26_v2  ;;  %v48_v7 = vsel %vm42_vm1, %v26_v2, 0.0  ;;  %v58_v11 = vrot.slane %v43_v4, 4  ;;  %v260_v39 = vmov 1966171168   ;;  %s261_s0 = smov [#allocation6]  }
  0x11   :  { %v44_v6 = vsel %vm42_vm1, %v38_v3, 0.0  ;;  %v70_v13 = vrot.slane %v48_v7, 4  ;;  %v92_v40 = vunpack.c.l.s4 %v260_v39  ;;  %v95_v45 = vshrl.u32 %v94_v41, 7  ;;  %s180_s16 = sshll.u32 %s261_s0, 4  ;;  %s181_s16 = int_to_ptr.vmem [resolvable:$true] %s180_s16 }
  0x12   :  { %v49_v8 = vsel %vm42_vm1, %v39_v5, 0.0  ;;  %v45_v9 = vadd.f32 %v44_v6, %v43_v4  ;;  %v64_v12 = vrot.slane %v44_v6, 4  ;;  %v59_v15 = vadd.f32 %v58_v11, %v43_v4  ;;  %s232_s17 = scalar_lea.vmem %s181_s16, 64  ;;  %p237_p6 = scmp.lt.s32.totalorder %s181_s16, %s181_s16 }
  0x13   :  { %v50_v10 = vadd.f32 %v49_v8, %v48_v7  ;;  %v76_v14 = vrot.slane %v49_v8, 4  ;;  %v71_v17 = vadd.f32 %v70_v13, %v48_v7  ;;  %v93_v44 = vunpack.c.0.s8 %v92_v40  ;;  %p233_p5 = scmp.ne.s32.totalorder %s181_s16, %s232_s17  ;;  %p238_p7 = scmp.lt.s32.totalorder %s232_s17, %s232_s17 }
  0x14   :  { %46 = vadd.xlane.f32.xlu0 %v45_v9  ;;  %v65_v16 = vadd.f32 %v64_v12, %v44_v6  ;;  %v60_v19 = vrot.slane %v59_v15, 2  ;;  %vm124_vm2 = vcmp.lt.s32.totalorder %v94_v41, 256 }
  0x15   :  { %v77_v18 = vadd.f32 %v76_v14, %v49_v8  ;;  %v72_v21 = vrot.slane %v71_v17, 2  ;;  %v96_v46 = vsub.s32 %v93_v44, %v95_v45  ;;  %p239_p8 = por %p238_p7, %p237_p6 }
  0x16   :  { %v66_v20 = vrot.slane %v65_v16, 2  ;;  %v61_v23 = vadd.f32 %v60_v19, %v59_v15 }
  0x17   :  { %v78_v22 = vrot.slane %v77_v18, 2  ;;  %v73_v25 = vadd.f32 %v72_v21, %v71_v17  ;;  %p240_p9 = pnand %p239_p8, %p233_p5 }
  0x18   :  { %51 = vadd.xlane.f32.xlu0 %v50_v10  ;;  %v67_v24 = vadd.f32 %v66_v20, %v65_v16  ;;  %v62_v27 = vrot.slane %v61_v23, 1 }
  0x19   :  { %v79_v26 = vadd.f32 %v78_v22, %v77_v18  ;;  %v74_v29 = vrot.slane %v73_v25, 1 }
  0x1a   :  { %v68_v28 = vrot.slane %v67_v24, 1  ;;  %v63_v31 = vadd.f32 %v62_v27, %v61_v23 }
  0x1b   :  { %v80_v30 = vrot.slane %v79_v26, 1  ;;  %v75_v33 = vadd.f32 %v74_v29, %v73_v25 }
  0x1c   :  { %v69_v32 = vadd.f32 %v68_v28, %v67_v24  ;;  %v82_v35 = vmul.f32 0.25, %v63_v31 }
  0x1d   :  { %v81_v34 = vadd.f32 %v80_v30, %v79_v26  ;;  %v84_v37 = vmul.f32 0.25, %v75_v33 }
  0x1e   :  { %v83_v36 = vmul.f32 0.25, %v69_v32 }
  0x1f   :  { %v85_v38 = vmul.f32 0.25, %v81_v34 }
  0x20   :  { %v90_v42 = vcombine.low %v82_v35, %v83_v36 }
  0x21   :  { %v105_v43 = vcombine.low %v84_v37, %v85_v38 }
  0x22   :  { %v97_v47 = vrot.slane %v90_v42, %v96_v46 }
  0x23   :  { %v112_v48 = vrot.slane %v105_v43, %v96_v46 }
  0x24   :  { %v104_v49 = vrot.slane %v97_v47, %v96_v46 }
  0x25   :  { %v119_v50 = vrot.slane %v112_v48, %v96_v46 }
  0x26   :  { %126 = vst.msk [vmem:[#allocation6] sm:$0x3] %vm124_vm2, %v104_v49 }
  0x27   :  { %127 = vst.msk [vmem:[#allocation6 + $0x2] sm:$0x3] %vm124_vm2, %v119_v50 }
  0x28   :  { %243 = shalt.err (!%p240_p9)
}
  0x29   :  { %s262_s18 = smov 32   ;;  %s263_s19 = smov 2   ;;  %v34_v51 = vld [vmem:[#allocation2] sm:$0xf]  ;;  %v35_v54 = vld [vmem:[#allocation2 + $0x4] sm:$0xf] }
  0x2a   :  { %186 = dma.vmem_to_hbm [thread:$0]  %s181_s16, 64, %s301_s2, [#allocation5], %s262_s18, %s262_s18, %s263_s19  }
  0x9d   :  { %v47_v52 = vpop.xlane.xlu0 %46 }
  0x9e   :  { %v53_v53 = vadd.f32 %v47_v52, %v34_v51 }
  0xa0   :  { %56 = vst.msk [vmem:[#allocation2] sm:$0xf] %vm31_vm0, %v53_v53 }
  0xa1   :  { %v52_v55 = vpop.xlane.xlu0 %51 }
  0xa2   :  { %v54_v56 = vadd.f32 %v52_v55, %v35_v54 }
  0xa4   :  { %57 = vst.msk [vmem:[#allocation2 + $0x4] sm:$0xf] %vm31_vm0, %v54_v56 }
  0xa7   :  { %v131_v57 = vld [vmem:[#allocation2] sm:$0xf] }
  0xa8   :  { %v133_v58 = vmul.f32 0.00390625, %v131_v57 }
  0xaa   :  { %v135_v59 = vmul.f32 %v133_v58, %v133_v58 }
  0xab   :  { %v132_v60 = vld [vmem:[#allocation2 + $0x4] sm:$0xf] }
  0xac   :  { %v137_v61 = vsel %vm31_vm0, %v135_v59, 0.0  ;;  %v134_v62 = vmul.f32 0.00390625, %v132_v60 }
  0xad   :  { %v138_v63 = vrot.slane %v137_v61, 4 }
  0xae   :  { %v136_v0 = vmul.f32 %v134_v62, %v134_v62 }
  0xaf   :  { %v139_v1 = vadd.f32 %v138_v63, %v137_v61 }
  0xb0   :  { %v144_v2 = vsel %vm31_vm0, %v136_v0, 0.0 }
  0xb1   :  { %v140_v3 = vrot.slane %v139_v1, 2  ;;  %v145_v4 = vrot.slane %v144_v2, 4 }
  0xb3   :  { %v141_v5 = vadd.f32 %v140_v3, %v139_v1  ;;  %v146_v6 = vadd.f32 %v145_v4, %v144_v2 }
  0xb5   :  { %v142_v7 = vrot.slane %v141_v5, 1  ;;  %v147_v8 = vrot.slane %v146_v6, 2 }
  0xb7   :  { %v143_v9 = vadd.f32 %v142_v7, %v141_v5  ;;  %v148_v10 = vadd.f32 %v147_v8, %v146_v6 }
  0xb9   :  { %204 = vrsqrt.f32 %v143_v9  ;;  %v149_v11 = vrot.slane %v148_v10, 1  ;;  %vm153_vm3 = vcmp.eq.f32.partialorder %v143_v9, inf  ;;  %v156_v15 = vand.u32 2147483648, %v143_v9 }
  0xba   :  { %vm155_vm4 = vcmp.eq.f32.partialorder %v143_v9, 0.0 }
  0xbb   :  { %v150_v12 = vadd.f32 %v149_v11, %v148_v10 }
  0xbd   :  { %206 = vrsqrt.f32 %v150_v12  ;;  %vm160_vm5 = vcmp.eq.f32.partialorder %v150_v12, inf  ;;  %v163_v21 = vand.u32 2147483648, %v150_v12  ;;  %vm162_vm6 = vcmp.eq.f32.partialorder %v150_v12, 0.0 }
  0xc6   :  { %v205_v13 = vpop.eup %204 }
  0xc7   :  { %v152_v14 = vmul.f32 %v205_v13, %v143_v9 }
  0xc9   :  { %v154_v16 = vsel %vm153_vm3, %v143_v9, %v152_v14 }
  0xca   :  { %v157_v17 = vsel %vm155_vm4, %v156_v15, %v154_v16  ;;  %v207_v18 = vpop.eup %206 }
  0xcb   :  { %v165_v19 = vadd.f32 1e-12, %v157_v17  ;;  %v159_v20 = vmul.f32 %v207_v18, %v150_v12 }
  0xcd   :  { %208 = vrcp.f32 %v165_v19  ;;  %v161_v22 = vsel %vm160_vm5, %v150_v12, %v159_v20 }
  0xce   :  { %v164_v23 = vsel %vm162_vm6, %v163_v21, %v161_v22 }
  0xcf   :  { %v166_v24 = vadd.f32 1e-12, %v164_v23 }
  0xd1   :  { %210 = vrcp.f32 %v166_v24 }
  0xda   :  { %v209_v25 = vpop.eup %208 }
  0xdb   :  { %v169_v26 = vmul.f32 %v209_v25, %v133_v58 }
  0xdd   :  { %171 = vst.msk [vmem:[%s300_s1] sm:$0xf] %vm31_vm0, %v169_v26 }
  0xde   :  { %v211_v27 = vpop.eup %210 }
  0xdf   :  { %v170_v28 = vmul.f32 %v211_v27, %v134_v62 }
  0xe1   :  { %172 = vst.msk [vmem:[%s300_s1 + $0x4] sm:$0xf] %vm31_vm0, %v170_v28 }
  0xe2   :  { %254 = dma.done.wait [#allocation5], 64  }
  0xe3   :  { %255 = vsyncadd [#allocation5], 4294967232 }
  0xe4   :  { %192 = vsyncpa [#allocation4], 1 }
  0xe5   :  { %193 = vsyncpa [#allocation5], 1 }

</bundles_post_ra>
